<compile_context>
chip_gen: v6e
topology: v6e:2x2x1
jax: 0.10.0
libtpu: 0.0.40
codegen_flags: <defaults>
</compile_context>

<pallas_src>
import math

import jax
import jax.numpy as jnp
from jax import lax
from jax.experimental import pallas as pl
from jax.experimental.pallas import tpu as pltpu

LN_EPS = 1e-12
_INV_SQRT2 = 1.0 / math.sqrt(2.0)


def _round_up(x, m):
    return (x + m - 1) // m * m


def _vmem_capacity_bytes():
    try:
        return int(pltpu.get_tpu_info().vmem_capacity_bytes)
    except Exception:
        return 64 * 1024 * 1024  # conservative fallback (v7x per-TensorCore VMEM)


def _estimate_vmem_bytes(tm, tn, H, x_b, w1_b, w2_b, h_b, out_b):
    est = 2 * tm * H * x_b      # x token tile (double-buffered)
    est += 2 * H * H * w1_b     # dense weight (resident, still double-buffered)
    est += 3 * 2 * H * 4        # dense bias + LN weight/bias (f32)
    est += 2 * H * tn * w2_b    # streamed decoder weight tile
    est += 2 * tn * 4           # decoder bias tile
    est += 2 * tm * tn * out_b  # output tile
    est += tm * H * h_b         # cached LN(gelu(dense(x))) scratch
    return est


def mlm_head_kernel(x_ref, w1_ref, b1_ref, ln_w_ref, ln_b_ref,
                    w2_ref, b2_ref, out_ref, h_ref):
    # ---- dense + GELU + LayerNorm: once per token tile (vocab step j == 0) ----
    @pl.when(pl.program_id(1) == 0)
    def _():
        # (tm, H) @ (H, H) on the MXU, native dtype in, f32 accumulation.
        h = jnp.dot(x_ref[...], w1_ref[...], preferred_element_type=jnp.float32)
        h = h + b1_ref[...]                                   # b1 already f32

        # exact erf GELU (matches the reference module)
        h = h * 0.5 * (1.0 + lax.erf(h * _INV_SQRT2))

        # TF-style LayerNorm: eps inside sqrt, biased variance
        u = jnp.mean(h, axis=-1, keepdims=True)
        s = jnp.mean((h - u) ** 2, axis=-1, keepdims=True)
        h = (h - u) * lax.rsqrt(s + LN_EPS)
        h = ln_w_ref[...] * h + ln_b_ref[...]                 # f32 params

        # Cast ONCE into the decoder-matmul dtype; reused by every vocab tile.
        h_ref[...] = h.astype(h_ref.dtype)

    # ---- decoder: (tm, H) @ (H, tn) per vocab tile, no per-step cast ----
    logits = jnp.dot(h_ref[...], w2_ref[...], preferred_element_type=jnp.float32)
    logits = logits + b2_ref[...]                              # b2 already f32
    out_ref[...] = logits.astype(out_ref.dtype)


def bert_only_mlm_head(x, w_dense, b_dense, ln_w, ln_b, w_dec, b_dec,
                       *, tm=1024, tn=1024, out_dtype=None, matmul_dtype=None):
    """BertOnlyMLMHead forward.

    x: (B, S, H).  w_dense (H, H) / w_dec (H, V) are pre-transposed to (in, out).
    Returns (B, S, V) logits in `out_dtype` (default: x.dtype — make it explicit
    if you need f32 logits from bf16 activations).
    `matmul_dtype` (e.g. jnp.bfloat16) optionally casts the matmul operands of
    an f32 checkpoint (halves the dominant W_dec HBM stream; f32 accumulation
    is kept, but results no longer bit-match the f32 reference).
    """
    B, S, H = x.shape
    V = w_dec.shape[1]
    T = B * S
    out_dtype = x.dtype if out_dtype is None else out_dtype

    if matmul_dtype is not None:
        x = x.astype(matmul_dtype)
        w_dense = w_dense.astype(matmul_dtype)
        w_dec = w_dec.astype(matmul_dtype)

    # No padding of x or W_dec: grid uses cdiv; Pallas masks boundary tiles.
    x2 = x.reshape(T, H)

    # Small resident params as (1, dim) f32 slabs (cast once, outside the hot loop).
    b_dense2 = b_dense.reshape(1, H).astype(jnp.float32)
    ln_w2 = ln_w.reshape(1, H).astype(jnp.float32)
    ln_b2 = ln_b.reshape(1, H).astype(jnp.float32)
    b_dec2 = b_dec.reshape(1, V).astype(jnp.float32)

    h_dtype = w_dec.dtype  # h scratch held in the decoder-matmul input dtype

    # ---- per-generation tile / VMEM budgeting ----
    tm = min(tm, _round_up(T, 8))
    tn = min(tn, _round_up(V, 128))
    cap = _vmem_capacity_bytes()
    budget = int(cap * 0.8)

    def est(tm_, tn_):
        return _estimate_vmem_bytes(
            tm_, tn_, H,
            jnp.dtype(x2.dtype).itemsize, jnp.dtype(w_dense.dtype).itemsize,
            jnp.dtype(w_dec.dtype).itemsize, jnp.dtype(h_dtype).itemsize,
            jnp.dtype(out_dtype).itemsize)

    while est(tm, tn) > budget and tm > 8:          # shrink tm first (keeps mult of 8)
        tm = max(8, _round_up(tm // 2, 8))
    while est(tm, tn) > budget and tn > 128:        # then tn (keeps mult of 128)
        tn = max(128, _round_up(tn // 2, 128))

    grid = (pl.cdiv(T, tm), pl.cdiv(V, tn))

    out2 = pl.pallas_call(
        mlm_head_kernel,
        out_shape=jax.ShapeDtypeStruct((T, V), out_dtype),
        grid_spec=pltpu.PrefetchScalarGridSpec(
            num_scalar_prefetch=0,
            grid=grid,
            in_specs=[
                pl.BlockSpec((tm, H), lambda i, j: (i, 0)),    # x token tile
                pl.BlockSpec((H, H), lambda i, j: (0, 0)),     # dense weight (resident)
                pl.BlockSpec((1, H), lambda i, j: (0, 0)),     # dense bias
                pl.BlockSpec((1, H), lambda i, j: (0, 0)),     # LN weight
                pl.BlockSpec((1, H), lambda i, j: (0, 0)),     # LN bias
                pl.BlockSpec((H, tn), lambda i, j: (0, j)),    # decoder weight tile (streamed)
                pl.BlockSpec((1, tn), lambda i, j: (0, j)),    # decoder bias tile
            ],
            out_specs=pl.BlockSpec((tm, tn), lambda i, j: (i, j)),
            scratch_shapes=[pltpu.VMEM((tm, H), h_dtype)],     # cached LN output
        ),
        compiler_params=pltpu.CompilerParams(
            # token axis parallel (megacore on v7x); vocab axis sequential so
            # the j==0 step that fills h_ref runs before the other j's.
            dimension_semantics=("parallel", "arbitrary"),
            vmem_limit_bytes=int(cap * 0.9),
        ),
    )(x2, w_dense, b_dense2, ln_w2, ln_b2, w_dec, b_dec2)

    return out2.reshape(B, S, V)


def reference(x, w_dense, b_dense, ln_w, ln_b, w_dec, b_dec):
    h = jnp.dot(x, w_dense) + b_dense
    h = h * 0.5 * (1.0 + lax.erf(h / math.sqrt(2.0)))
    u = jnp.mean(h, axis=-1, keepdims=True)
    s = jnp.mean((h - u) ** 2, axis=-1, keepdims=True)
    h = (h - u) / jnp.sqrt(s + LN_EPS)
    h = ln_w * h + ln_b
    return jnp.dot(h, w_dec) + b_dec


if __name__ == "__main__":
    # Small config consistent with the module: hidden_size=32, vocab_size=128
    B, S, H, V = 2, 8, 32, 128

    key = jax.random.PRNGKey(0)
    kx, kw1, kb1, kw2 = jax.random.split(key, 4)

    x = jax.random.normal(kx, (B, S, H), dtype=jnp.float32)

    # nn.Linear-style uniform init, stored pre-transposed to (in, out);
    # LayerNorm weight=1 / bias=0; decoder bias starts at 0.
    w_dense = jax.random.uniform(kw1, (H, H), jnp.float32,
                                 -1.0 / math.sqrt(H), 1.0 / math.sqrt(H))
    b_dense = jax.random.uniform(kb1, (H,), jnp.float32,
                                 -1.0 / math.sqrt(H), 1.0 / math.sqrt(H))
    ln_w = jnp.ones((H,), jnp.float32)
    ln_b = jnp.zeros((H,), jnp.float32)
    w_dec = jax.random.uniform(kw2, (H, V), jnp.float32,
                               -1.0 / math.sqrt(H), 1.0 / math.sqrt(H))
    b_dec = jnp.zeros((V,), jnp.float32)

    out = bert_only_mlm_head(x, w_dense, b_dense, ln_w, ln_b, w_dec, b_dec)
    out = jax.block_until_ready(out)

    ref = reference(x, w_dense, b_dense, ln_w, ln_b, w_dec, b_dec)
    assert out.shape == (B, S, V)
    assert jnp.allclose(out, ref, atol=1e-4, rtol=1e-4)

    print("KERNEL_OK")
</pallas_src>

<mosaic_0001>
module attributes {stable_mosaic.version = 11 : i64} {
  func.func @mlm_head_kernel(%arg0: i32, %arg1: i32, %arg2: memref<16x32xf32, #tpu.memory_space<vmem>>, %arg3: memref<32x32xf32, #tpu.memory_space<vmem>>, %arg4: memref<1x32xf32, #tpu.memory_space<vmem>>, %arg5: memref<1x32xf32, #tpu.memory_space<vmem>>, %arg6: memref<1x32xf32, #tpu.memory_space<vmem>>, %arg7: memref<32x128xf32, #tpu.memory_space<vmem>>, %arg8: memref<1x128xf32, #tpu.memory_space<vmem>>, %arg9: memref<16x128xf32, #tpu.memory_space<vmem>>, %arg10: memref<16x32xf32, #tpu.memory_space<vmem>>) attributes {dimension_semantics = [#tpu.dimension_semantics<parallel>, #tpu.dimension_semantics<arbitrary>], iteration_bounds = array<i64: 1, 1>, scalar_prefetch = 0 : i64, scratch_operands = 1 : i64, tpu.core_type = #tpu.core_type<tc>, window_params = [{transform_indices = @transform_0, window_bounds = array<i64: 16, 32>}, {pipeline_mode = #tpu.pipeline_mode<synchronous>, transform_indices = @transform_1, window_bounds = array<i64: 32, 32>}, {pipeline_mode = #tpu.pipeline_mode<synchronous>, transform_indices = @transform_2, window_bounds = array<i64: 1, 32>}, {pipeline_mode = #tpu.pipeline_mode<synchronous>, transform_indices = @transform_3, window_bounds = array<i64: 1, 32>}, {pipeline_mode = #tpu.pipeline_mode<synchronous>, transform_indices = @transform_4, window_bounds = array<i64: 1, 32>}, {transform_indices = @transform_5, window_bounds = array<i64: 32, 128>}, {transform_indices = @transform_6, window_bounds = array<i64: 1, 128>}, {transform_indices = @transform_7, window_bounds = array<i64: 16, 128>}]} {
    %c0_i32 = arith.constant 0 : i32
    %0 = arith.cmpi eq, %arg1, %c0_i32 : i32
    %1 = arith.extui %0 : i1 to i32
    %c0_i32_0 = arith.constant 0 : i32
    %2 = arith.cmpi ne, %1, %c0_i32_0 : i32
    scf.if %2 {
      %c0_8 = arith.constant 0 : index
      %c0_9 = arith.constant 0 : index
      %10 = vector.load %arg2[%c0_8, %c0_9] : memref<16x32xf32, #tpu.memory_space<vmem>>, vector<16x32xf32>
      %c0_10 = arith.constant 0 : index
      %c0_11 = arith.constant 0 : index
      %11 = vector.load %arg3[%c0_10, %c0_11] : memref<32x32xf32, #tpu.memory_space<vmem>>, vector<32x32xf32>
      %cst_12 = arith.constant dense<0.000000e+00> : vector<16x32xf32>
      %12 = tpu.matmul %10, %11, %cst_12 {dimension_numbers = #tpu.dot_dimension_numbers<[1], [0], [0], [1], [0, 0, 1, 1], [], []>} : vector<16x32xf32>, vector<32x32xf32>, vector<16x32xf32> -> vector<16x32xf32>
      %c0_13 = arith.constant 0 : index
      %c0_14 = arith.constant 0 : index
      %13 = vector.load %arg4[%c0_13, %c0_14] : memref<1x32xf32, #tpu.memory_space<vmem>>, vector<1x32xf32>
      %14 = vector.broadcast %13 : vector<1x32xf32> to vector<16x32xf32>
      %15 = arith.addf %12, %14 : vector<16x32xf32>
      %cst_15 = arith.constant 5.000000e-01 : f32
      %16 = vector.broadcast %cst_15 : f32 to vector<16x32xf32>
      %17 = arith.mulf %15, %16 : vector<16x32xf32>
      %cst_16 = arith.constant 0.707106769 : f32
      %18 = vector.broadcast %cst_16 : f32 to vector<16x32xf32>
      %19 = arith.mulf %15, %18 : vector<16x32xf32>
      %20 = math.erf %19 : vector<16x32xf32>
      %cst_17 = arith.constant 1.000000e+00 : f32
      %21 = vector.broadcast %cst_17 : f32 to vector<16x32xf32>
      %22 = arith.addf %21, %20 : vector<16x32xf32>
      %23 = arith.mulf %17, %22 : vector<16x32xf32>
      %cst_18 = arith.constant dense<0.000000e+00> : vector<16xf32>
      %24 = vector.multi_reduction <add>, %23, %cst_18 [1] : vector<16x32xf32> to vector<16xf32>
      %25 = vector.shape_cast %24 : vector<16xf32> to vector<16x1xf32>
      %cst_19 = arith.constant 3.200000e+01 : f32
      %26 = vector.broadcast %cst_19 : f32 to vector<16x1xf32>
      %27 = arith.divf %25, %26 : vector<16x1xf32>
      %28 = vector.broadcast %27 : vector<16x1xf32> to vector<16x32xf32>
      %29 = arith.subf %23, %28 : vector<16x32xf32>
      %30 = arith.mulf %29, %29 : vector<16x32xf32>
      %cst_20 = arith.constant dense<0.000000e+00> : vector<16xf32>
      %31 = vector.multi_reduction <add>, %30, %cst_20 [1] : vector<16x32xf32> to vector<16xf32>
      %32 = vector.shape_cast %31 : vector<16xf32> to vector<16x1xf32>
      %cst_21 = arith.constant 3.200000e+01 : f32
      %33 = vector.broadcast %cst_21 : f32 to vector<16x1xf32>
      %34 = arith.divf %32, %33 : vector<16x1xf32>
      %35 = vector.broadcast %27 : vector<16x1xf32> to vector<16x32xf32>
      %36 = arith.subf %23, %35 : vector<16x32xf32>
      %cst_22 = arith.constant 9.99999996E-13 : f32
      %37 = vector.broadcast %cst_22 : f32 to vector<16x1xf32>
      %38 = arith.addf %34, %37 : vector<16x1xf32>
      %39 = math.rsqrt %38 : vector<16x1xf32>
      %40 = vector.broadcast %39 : vector<16x1xf32> to vector<16x32xf32>
      %41 = arith.mulf %36, %40 : vector<16x32xf32>
      %c0_23 = arith.constant 0 : index
      %c0_24 = arith.constant 0 : index
      %42 = vector.load %arg5[%c0_23, %c0_24] : memref<1x32xf32, #tpu.memory_space<vmem>>, vector<1x32xf32>
      %43 = vector.broadcast %42 : vector<1x32xf32> to vector<16x32xf32>
      %44 = arith.mulf %43, %41 : vector<16x32xf32>
      %c0_25 = arith.constant 0 : index
      %c0_26 = arith.constant 0 : index
      %45 = vector.load %arg6[%c0_25, %c0_26] : memref<1x32xf32, #tpu.memory_space<vmem>>, vector<1x32xf32>
      %46 = vector.broadcast %45 : vector<1x32xf32> to vector<16x32xf32>
      %47 = arith.addf %44, %46 : vector<16x32xf32>
      %c0_27 = arith.constant 0 : index
      %c0_28 = arith.constant 0 : index
      %48 = vector.load %arg10[%c0_27, %c0_28] : memref<16x32xf32, #tpu.memory_space<vmem>>, vector<16x32xf32>
      tpu.vector_store %arg10[%c0_27, %c0_28], %47 {strides = array<i32>} : memref<16x32xf32, #tpu.memory_space<vmem>>, vector<16x32xf32>,
    } else {
    }
    %c0 = arith.constant 0 : index
    %c0_1 = arith.constant 0 : index
    %3 = vector.load %arg10[%c0, %c0_1] : memref<16x32xf32, #tpu.memory_space<vmem>>, vector<16x32xf32>
    %c0_2 = arith.constant 0 : index
    %c0_3 = arith.constant 0 : index
    %4 = vector.load %arg7[%c0_2, %c0_3] : memref<32x128xf32, #tpu.memory_space<vmem>>, vector<32x128xf32>
    %cst = arith.constant dense<0.000000e+00> : vector<16x128xf32>
    %5 = tpu.matmul %3, %4, %cst {dimension_numbers = #tpu.dot_dimension_numbers<[1], [0], [0], [1], [0, 0, 1, 1], [], []>} : vector<16x32xf32>, vector<32x128xf32>, vector<16x128xf32> -> vector<16x128xf32>
    %c0_4 = arith.constant 0 : index
    %c0_5 = arith.constant 0 : index
    %6 = vector.load %arg8[%c0_4, %c0_5] : memref<1x128xf32, #tpu.memory_space<vmem>>, vector<1x128xf32>
    %7 = vector.broadcast %6 : vector<1x128xf32> to vector<16x128xf32>
    %8 = arith.addf %5, %7 : vector<16x128xf32>
    %c0_6 = arith.constant 0 : index
    %c0_7 = arith.constant 0 : index
    %9 = vector.load %arg9[%c0_6, %c0_7] : memref<16x128xf32, #tpu.memory_space<vmem>>, vector<16x128xf32>
    tpu.vector_store %arg9[%c0_6, %c0_7], %8 {strides = array<i32>} : memref<16x128xf32, #tpu.memory_space<vmem>>, vector<16x128xf32>,
    return
  }
  func.func @transform_0(%arg0: i32, %arg1: i32) -> (i32, i32) {
    %c0_i32 = arith.constant 0 : i32
    %c0_i32_0 = arith.constant 0 : i32
    return %arg0, %c0_i32 : i32, i32
  }
  func.func @transform_1(%arg0: i32, %arg1: i32) -> (i32, i32) {
    %c0_i32 = arith.constant 0 : i32
    %c0_i32_0 = arith.constant 0 : i32
    %c0_i32_1 = arith.constant 0 : i32
    return %c0_i32, %c0_i32_0 : i32, i32
  }
  func.func @transform_2(%arg0: i32, %arg1: i32) -> (i32, i32) {
    %c0_i32 = arith.constant 0 : i32
    %c0_i32_0 = arith.constant 0 : i32
    %c0_i32_1 = arith.constant 0 : i32
    return %c0_i32, %c0_i32_0 : i32, i32
  }
  func.func @transform_3(%arg0: i32, %arg1: i32) -> (i32, i32) {
    %c0_i32 = arith.constant 0 : i32
    %c0_i32_0 = arith.constant 0 : i32
    %c0_i32_1 = arith.constant 0 : i32
    return %c0_i32, %c0_i32_0 : i32, i32
  }
  func.func @transform_4(%arg0: i32, %arg1: i32) -> (i32, i32) {
    %c0_i32 = arith.constant 0 : i32
    %c0_i32_0 = arith.constant 0 : i32
    %c0_i32_1 = arith.constant 0 : i32
    return %c0_i32, %c0_i32_0 : i32, i32
  }
  func.func @transform_5(%arg0: i32, %arg1: i32) -> (i32, i32) {
    %c0_i32 = arith.constant 0 : i32
    %c0_i32_0 = arith.constant 0 : i32
    return %c0_i32, %arg1 : i32, i32
  }
  func.func @transform_6(%arg0: i32, %arg1: i32) -> (i32, i32) {
    %c0_i32 = arith.constant 0 : i32
    %c0_i32_0 = arith.constant 0 : i32
    return %c0_i32, %arg1 : i32, i32
  }
  func.func @transform_7(%arg0: i32, %arg1: i32) -> (i32, i32) {
    %c0_i32 = arith.constant 0 : i32
    return %arg0, %arg1 : i32, i32
  }
}

</mosaic_0001>

<bundles_post_ra>
// kernel: tpu_custom_call.1
= control target key start
LH: loop header
LB: loop body
LE: loop exit
PB: predicated region body
PF: predicated region fallthrough
CT: control target
= control target key end

     0   :  { %12 = vsyncpa [#allocation4], 0  ;;  %s573_s0 = inlined_call_operand.hbm [shape: f32[16,32], index: 0, kind: input, shape index: {}]   ;;  %s574_s1 = inlined_call_operand.hbm [shape: f32[32,32], index: 1, kind: input, shape index: {}]   ;;  %s575_s2 = inlined_call_operand.vmem [shape: f32[1,32], index: 2, kind: input, shape index: {}]   ;;  %s576_s3 = inlined_call_operand.vmem [shape: f32[1,32], index: 3, kind: input, shape index: {}]   ;;  %s577_s4 = inlined_call_operand.vmem [shape: f32[1,32], index: 4, kind: input, shape index: {}]   ;;  %s578_s5 = inlined_call_operand.hbm [shape: f32[32,128], index: 5, kind: input, shape index: {}]   ;;  %s579_s6 = inlined_call_operand.vmem [shape: f32[1,128], index: 6, kind: input, shape index: {}]   ;;  %s580_s7 = inlined_call_operand.hbm [shape: f32[16,128], index: 7, kind: output, shape index: {}]  }
   0x1   :  { %13 = vsyncpa [#allocation7], 0 }
   0x2   :  { %14 = vsyncpa [#allocation5], 0  ;;  %s481_s24 = smov [#allocation6]   ;;  %s482_s26 = smov [#allocation3]  }
   0x3   :  { %s32_s25 = sshll.u32 %s481_s24, 4  ;;  %s20_s27 = sshll.u32 %s482_s26, 4  ;;  %s33_s25 = int_to_ptr.vmem [resolvable:$true] %s32_s25  ;;  %s21_s27 = int_to_ptr.vmem [resolvable:$true] %s20_s27 }
   0x4   :  { %s403_s28 = scalar_lea.vmem %s33_s25, 512  ;;  %p408_p1 = scmp.lt.s32.totalorder %s33_s25, %s33_s25 }
   0x5   :  { %p404_p0 = scmp.ne.s32.totalorder %s33_s25, %s403_s28  ;;  %p409_p2 = scmp.lt.s32.totalorder %s403_s28, %s403_s28 }
   0x7   :  { %p410_p3 = por %p409_p2, %p408_p1 }
   0x9   :  { %p411_p4 = pnand %p410_p3, %p404_p0 }
   0xb   :  { %414 = shalt.err (!%p411_p4)
}
   0xc   :  { %s483_s29 = smov 128   ;;  %s484_s30 = smov 8  }
   0xd   :  { %38 = dma.hbm_to_vmem [thread:$0]  %s574_s1, 512, %s33_s25, [#allocation7], %s483_s29, %s483_s29, %s484_s30  }
   0xe   :  { %s423_s10 = scalar_lea.vmem %s21_s27, 256  ;;  %p428_p6 = scmp.lt.s32.totalorder %s21_s27, %s21_s27 }
   0xf   :  { %p424_p5 = scmp.ne.s32.totalorder %s21_s27, %s423_s10  ;;  %p429_p7 = scmp.lt.s32.totalorder %s423_s10, %s423_s10 }
  0x11   :  { %p430_p8 = por %p429_p7, %p428_p6 }
  0x13   :  { %p431_p9 = pnand %p430_p8, %p424_p5 }
  0x15   :  { %434 = shalt.err (!%p431_p9)
}
  0x16   :  { %26 = dma.hbm_to_vmem [thread:$0]  %s573_s0, 256, %s21_s27, [#allocation4], %s483_s29, %s483_s29, %s484_s30  }
  0x17   :  { %s485_s13 = smov [#allocation8]  }
  0x18   :  { %s50_s14 = sshll.u32 %s485_s13, 4  ;;  %s51_s14 = int_to_ptr.vmem [resolvable:$true] %s50_s14 }
  0x19   :  { %s443_s15 = scalar_lea.vmem %s51_s14, 512  ;;  %p448_p11 = scmp.lt.s32.totalorder %s51_s14, %s51_s14 }
  0x1a   :  { %p444_p10 = scmp.ne.s32.totalorder %s51_s14, %s443_s15  ;;  %p449_p12 = scmp.lt.s32.totalorder %s443_s15, %s443_s15 }
  0x1c   :  { %p450_p13 = por %p449_p12, %p448_p11 }
  0x1e   :  { %p451_p0 = pnand %p450_p13, %p444_p10 }
  0x20   :  { %454 = shalt.err (!%p451_p0)
}
  0x21   :  { %56 = dma.hbm_to_vmem [thread:$0]  %s578_s5, 512, %s51_s14, [#allocation7], %s483_s29, %s483_s29, %s484_s30  }
  0x22   :  { %475 = dma.done.wait [#allocation4], 256  }
  0x23   :  { %476 = vsyncadd [#allocation4], 4294967040 }
  0x24   :  { %477 = dma.done.wait [#allocation7], 1024  }
  0x25   :  { %478 = vsyncadd [#allocation7], 4294966272  ;;  %vm85_vm0 = vcmask 261120   ;;  %v77_v0 = vld [vmem:[#allocation6 + $0x18] sm:$0xff]  ;;  %v76_v1 = vld [vmem:[#allocation6 + $0x10] sm:$0xff] }
  0x26   :  { %359 = vmatprep.subr.mxu0 %v77_v0  ;;  %v72_v2 = vld [vmem:[#allocation3] sm:$0xff]  ;;  %v75_v3 = vld [vmem:[#allocation6 + $0x8] sm:$0xff]  ;;  %v74_v4 = vld [vmem:[#allocation6] sm:$0xff] }
  0x27   :  { %360 = vmatpush3.msra.mxu0 %v77_v0  ;;  %367 = vmatprep.mubr.msk.f32.mxu0 %vm85_vm0, %v72_v2  ;;  %v73_v5 = vld [vmem:[#allocation3 + $0x8] sm:$0xff]  ;;  %v339_v6 = vld [vmem:[%s575_s2] ss:$0 sm:$0xff]  ;;  %v228_v34 = vld [vmem:[#allocation8 + $0x10] sm:$0xff] }
  0x28   :  { %361 = vmatprep.subr.mxu0 %v76_v1  ;;  %v229_v33 = vld [vmem:[#allocation8 + $0x18] sm:$0xff]  ;;  %v227_v35 = vld [vmem:[#allocation8 + $0x8] sm:$0xff]  ;;  %v226_v36 = vld [vmem:[#allocation8] sm:$0xff] }
  0x29   :  { %362 = vmatpush3.msra.mxu0 %v76_v1  ;;  %370 = vmatprep.subr.mxu1 %v229_v33  ;;  %v342_v44 = vld [vmem:[%s576_s3] ss:$0 sm:$0xff] }
  0x2a   :  { %363 = vmatprep.subr.mxu0 %v75_v3  ;;  %371 = vmatpush3.msra.mxu1 %v229_v33  ;;  %v343_v46 = vld [vmem:[%s577_s4] ss:$0 sm:$0xff]  ;;  %s486_s4 = smov [#allocation9]  }
  0x2b   :  { %364 = vmatpush3.msra.mxu0 %v75_v3  ;;  %372 = vmatprep.subr.mxu1 %v228_v34  ;;  %v344_v55 = vld [vmem:[%s579_s6] ss:$0 sm:$0xff]  ;;  %s326_s21 = sshll.u32 %s486_s4, 4  ;;  %s327_s21 = int_to_ptr.vmem [resolvable:$true] %s326_s21 }
  0x2c   :  { %365 = vmatprep.subr.mxu0 %v74_v4  ;;  %373 = vmatpush3.msra.mxu1 %v228_v34  ;;  %s455_s22 = scalar_lea.vmem %s327_s21, 256  ;;  %p460_p2 = scmp.lt.s32.totalorder %s327_s21, %s327_s21 }
  0x2d   :  { %366 = vmatpush3.msra.mxu0 %v74_v4  ;;  %374 = vmatprep.subr.mxu1 %v227_v35  ;;  %p456_p1 = scmp.ne.s32.totalorder %s327_s21, %s455_s22  ;;  %p461_p3 = scmp.lt.s32.totalorder %s455_s22, %s455_s22 }
  0x2e   :  { %368 = vmatmul.mubr.msk.f32.vlgmr.msra.gmra.mxu0 %vm85_vm0, %v73_v5  ;;  %375 = vmatpush3.msra.mxu1 %v227_v35 }
  0x2f   :  { %376 = vmatprep.subr.mxu1 %v226_v36  ;;  %p462_p4 = por %p461_p3, %p460_p2 }
  0x30   :  { %377 = vmatpush3.msra.mxu1 %v226_v36 }
  0x31   :  { %p463_p5 = pnand %p462_p4, %p456_p1 }
  0xee   :  { %v369_v7 = vpop.f32.mrf.mxu0 }
  0xef   :  { %v164_v8 = vadd.f32 %v369_v7, %v339_v6 }
  0xf0   :  { %v158_v9 = vpop.f32.mrf.mxu0 }
  0xf1   :  { %v170_v10 = vmul.f32 0.70710677, %v164_v8  ;;  %v159_v11 = vadd.f32 %v339_v6, %v158_v9  ;;  %v168_v18 = vmul.f32 0.5, %v164_v8 }
  0xf3   :  { %387 = verf.f32 %v170_v10  ;;  %v169_v12 = vmul.f32 0.70710677, %v159_v11  ;;  %v167_v15 = vmul.f32 0.5, %v159_v11 }
  0xf5   :  { %389 = verf.f32 %v169_v12 }
 0x100   :  { %v388_v13 = vpop.eup %387 }
 0x101   :  { %v174_v17 = vadd.f32 1.0, %v388_v13 }
 0x102   :  { %v390_v14 = vpop.eup %389 }
 0x103   :  { %v173_v16 = vadd.f32 1.0, %v390_v14  ;;  %v176_v21 = vmul.f32 %v174_v17, %v168_v18 }
 0x105   :  { %v175_v19 = vmul.f32 %v173_v16, %v167_v15  ;;  %v180_v22 = vsel %vm85_vm0, %v176_v21, 0.0 }
 0x107   :  { %v177_v20 = vsel %vm85_vm0, %v175_v19, 0.0 }
 0x108   :  { %178 = vadd.xlane.f32.xlu0 %v177_v20 }
 0x10c   :  { %181 = vadd.xlane.f32.xlu0 %v180_v22 }
 0x191   :  { %v179_v23 = vpop.xlane.xlu0 %178 }
 0x192   :  { %v184_v24 = vmul.f32 0.03125, %v179_v23 }
 0x194   :  { %v186_v25 = vsub.f32 %v175_v19, %v184_v24 }
 0x195   :  { %v182_v26 = vpop.xlane.xlu0 %181 }
 0x196   :  { %v185_v27 = vmul.f32 0.03125, %v182_v26  ;;  %v188_v28 = vmul.f32 %v186_v25, %v186_v25 }
 0x198   :  { %v187_v29 = vsub.f32 %v176_v21, %v185_v27  ;;  %v190_v30 = vsel %vm85_vm0, %v188_v28, 0.0 }
 0x199   :  { %191 = vadd.xlane.f32.xlu1 %v190_v30 }
 0x19a   :  { %v189_v31 = vmul.f32 %v187_v29, %v187_v29 }
 0x19c   :  { %v193_v32 = vsel %vm85_vm0, %v189_v31, 0.0 }
 0x19d   :  { %194 = vadd.xlane.f32.xlu1 %v193_v32 }
 0x222   :  { %v192_v37 = vpop.xlane.xlu1 %191 }
 0x223   :  { %v196_v38 = vmul.f32 0.03125, %v192_v37 }
 0x225   :  { %v198_v39 = vadd.f32 1e-12, %v196_v38 }
 0x226   :  { %v195_v40 = vpop.xlane.xlu1 %194 }
 0x227   :  { %391 = vrsqrt.f32 %v198_v39  ;;  %v197_v41 = vmul.f32 0.03125, %v195_v40 }
 0x229   :  { %v199_v42 = vadd.f32 1e-12, %v197_v41 }
 0x22b   :  { %393 = vrsqrt.f32 %v199_v42 }
 0x234   :  { %v392_v43 = vpop.eup %391 }
 0x235   :  { %v202_v45 = vmul.f32 %v392_v43, %v186_v25 }
 0x237   :  { %v211_v47 = vmul.f32 %v342_v44, %v202_v45 }
 0x238   :  { %v394_v48 = vpop.eup %393 }
 0x239   :  { %v220_v49 = vadd.f32 %v343_v46, %v211_v47  ;;  %v203_v50 = vmul.f32 %v394_v48, %v187_v29 }
 0x23b   :  { %222 = vst.msk [vmem:[#allocation2] sm:$0xff] %vm85_vm0, %v220_v49  ;;  %v212_v51 = vmul.f32 %v342_v44, %v203_v50 }
 0x23d   :  { %v221_v52 = vadd.f32 %v343_v46, %v212_v51 }
 0x23f   :  { %223 = vst.msk [vmem:[#allocation2 + $0x8] sm:$0xff] %vm85_vm0, %v221_v52 }
 0x242   :  { %v224_v53 = vld [vmem:[#allocation2] sm:$0xff] }
 0x243   :  { %378 = vmatprep.mubr.msk.f32.mxu1 %vm85_vm0, %v224_v53 }
 0x246   :  { %v225_v54 = vld [vmem:[#allocation2 + $0x8] sm:$0xff] }
 0x247   :  { %379 = vmatmul.mubr.msk.f32.vlgmr.msra.gmra.mxu1 %vm85_vm0, %v225_v54 }
 0x307   :  { %v380_v56 = vpop.f32.mrf.mxu1 }
 0x308   :  { %v316_v57 = vadd.f32 %v380_v56, %v344_v55 }
 0x309   :  { %v310_v58 = vpop.f32.mrf.mxu1 }
 0x30a   :  { %320 = vst [vmem:[#allocation9 + $0x8] sm:$0xff] %v316_v57  ;;  %v311_v59 = vadd.f32 %v344_v55, %v310_v58 }
 0x30c   :  { %319 = vst [vmem:[#allocation9] sm:$0xff] %v311_v59 }
 0x30d   :  { %466 = shalt.err (!%p463_p5)
}
 0x30e   :  { %332 = dma.vmem_to_hbm [thread:$0]  %s327_s21, 256, %s580_s7, [#allocation5], %s483_s29, %s483_s29, %s484_s30  }
 0x30f   :  { %479 = dma.done.wait [#allocation5], 256  }
 0x310   :  { %480 = vsyncadd [#allocation5], 4294967040 }
 0x311   :  { %336 = vsyncpa [#allocation4], 1 }
 0x312   :  { %337 = vsyncpa [#allocation7], 1 }
 0x313   :  { %338 = vsyncpa [#allocation5], 1 }

</bundles_post_ra>
